<compile_context>
chip_gen: v7x
topology: tpu7x:2x2x1
jax: 0.10.0
libtpu: 0.0.40
codegen_flags: <defaults>
</compile_context>

<pallas_src>
import functools
import math

import jax
import jax.numpy as jnp
from jax import lax
from jax.experimental import pallas as pl
from jax.experimental.pallas import tpu as pltpu

LANE = 128       # lane width of a vreg
SUB_BF16 = 16    # bf16 packs 16 sublanes per vreg


def _round_up(x, m):
    return ((x + m - 1) // m) * m


# ----------------------------- Pallas kernel ------------------------------ #
def _conv_kernel(xs_cur_ref, xs_nxt_ref, w_ref, b_ref, o_ref, patch_ref,
                 *, K, C_in_p, stride, dilation, TT):
    """One (batch, L_out-tile, C_out-tile) grid step.

    xs_cur_ref: (1, stride, C_in_p, TT)    compute dtype — current time tile
    xs_nxt_ref: (1, stride, C_in_p, HALO)  compute dtype — head of next tile
    w_ref:      (TCO, K*C_in_p)            compute dtype
    b_ref:      (TCO, 1)                   f32
    o_ref:      (1, TCO, TT)               output dtype (== x.dtype)
    patch_ref:  (K*C_in_p, TT)             compute dtype — persistent scratch
    """
    # Build the unfolded patch once per (batch, time-tile); the innermost
    # C_out-tile axis (marked "arbitrary") reuses it for every weight tile.
    @pl.when(pl.program_id(2) == 0)
    def _build_patch():
        for k in range(K):
            off = k * dilation
            q, r = off // stride, off % stride          # lane shift / phase
            rows = slice(k * C_in_p, (k + 1) * C_in_p)
            if q == 0:
                patch_ref[rows, :] = xs_cur_ref[0, r]
            elif q < TT:
                patch_ref[rows, :TT - q] = xs_cur_ref[0, r, :, q:]
                patch_ref[rows, TT - q:] = xs_nxt_ref[0, r, :, :q]
            else:  # q == TT == HALO: tap lies entirely in the halo block
                patch_ref[rows, :] = xs_nxt_ref[0, r, :, q - TT:q]

    # Single MXU matmul; contraction over K*C_in_p, f32 accumulation.
    acc = jnp.dot(w_ref[...], patch_ref[...],
                  preferred_element_type=jnp.float32)
    o_ref[0] = (acc + b_ref[...]).astype(o_ref.dtype)


# ------------------------------ Module port -------------------------------- #
def _max_cout_tile():
    # v5e's MXU is 4x(128x128): a 256-row weight tile buys nothing there.
    try:
        kind = jax.devices()[0].device_kind.lower()
    except Exception:
        kind = ""
    return 128 if "v5" in kind else 256


def same_pad_conv1d(x, weight, bias, *, stride=1, dilation=1,
                    compute_dtype=jnp.bfloat16, tt_target=512):
    """
    PyTorch SamePadConv1d.forward.

    x:      (N, C_in, L_in)
    weight: (C_out, C_in, K)   (PyTorch Conv1d layout)
    bias:   (C_out,)
    returns (N, C_out, L_out) with L_out = ceil(L_in / stride), dtype == x.dtype
    compute_dtype: MXU operand precision (explicit knob; bf16 by default).
    """
    N, C_in, L_in = x.shape
    C_out, _, K = weight.shape

    # --- exact "same" padding arithmetic from the PyTorch module ---
    eff_k = dilation * (K - 1) + 1
    L_out = -(-L_in // stride)                       # ceil(L_in / stride)
    pad_needed = max((L_out - 1) * stride + eff_k - L_in, 0)
    pad_left = pad_needed // 2

    # --- tiling ---
    Qmax = ((K - 1) * dilation) // stride            # max tap shift (polyphase T)
    HALO = _round_up(max(Qmax, 1), LANE)             # halo block width (lanes)

    C_in_p = _round_up(C_in, SUB_BF16)               # bf16 sublane packing
    c8 = _round_up(C_out, 8)
    max_tco = _max_cout_tile()
    if c8 >= max_tco:
        TCO = max_tco
    elif c8 >= 128:
        TCO = 128
    else:
        TCO = c8
    C_out_p = _round_up(c8, TCO)
    n_co = C_out_p // TCO

    # Time tile: as large as sensible, but keep the patch <= ~8 MiB so the
    # whole working set stays well inside v7x's 64 MiB VMEM.
    patch_budget = 8 * 1024 * 1024
    tt_cap = max(LANE, (patch_budget // (2 * K * C_in_p)) // LANE * LANE)
    TT = min(tt_target, tt_cap, _round_up(L_out, LANE))
    TT = _round_up(max(TT, LANE), HALO)              # multiple of HALO (and 128)

    L_out_p = _round_up(L_out, TT)
    n_t = L_out_p // TT
    T_total = n_t * TT + HALO                        # halo block always in-bounds
    L_poly = T_total * stride

    # --- glue: pad (+ polyphase relayout only when stride > 1) ---
    pad_right_total = L_poly - L_in - pad_left
    x_p = jnp.pad(x.astype(compute_dtype),
                  ((0, 0), (0, C_in_p - C_in), (pad_left, pad_right_total)))
    if stride == 1:
        x_s = x_p[:, None, :, :]                     # (N, 1, C_in_p, T_total) — free
    else:
        x_s = (x_p.reshape(N, C_in_p, T_total, stride)
                  .transpose(0, 3, 1, 2))            # (N, stride, C_in_p, T_total)

    # weight[co, ci, k] -> w_mat[co, k*C_in_p + ci], matching patch row order
    w_p = jnp.pad(weight, ((0, C_out_p - C_out), (0, C_in_p - C_in), (0, 0)))
    w_mat = (jnp.transpose(w_p, (0, 2, 1))
                .reshape(C_out_p, K * C_in_p)
                .astype(compute_dtype))
    b_col = (jnp.pad(bias, (0, C_out_p - C_out))
                .reshape(C_out_p, 1).astype(jnp.float32))

    kernel = functools.partial(_conv_kernel, K=K, C_in_p=C_in_p,
                               stride=stride, dilation=dilation, TT=TT)

    csize = jnp.dtype(compute_dtype).itemsize
    osize = x.dtype.itemsize
    bytes_accessed = (N * stride * C_in_p * n_t * (TT + HALO) * csize   # activations
                      + N * n_t * C_out_p * K * C_in_p * csize          # weights
                      + N * n_t * C_out_p * 4                           # bias
                      + N * C_out_p * L_out_p * osize)                  # output

    out_p = pl.pallas_call(
        kernel,
        out_shape=jax.ShapeDtypeStruct((N, C_out_p, L_out_p), x.dtype),
        grid_spec=pltpu.PrefetchScalarGridSpec(
            num_scalar_prefetch=0,
            # C_out innermost ("arbitrary"): x tile DMA + unfold reused across co.
            grid=(N, n_t, n_co),
            in_specs=[
                pl.BlockSpec((1, x_s.shape[1], C_in_p, TT),
                             lambda n, t, co: (n, 0, 0, t)),                     # current tile
                pl.BlockSpec((1, x_s.shape[1], C_in_p, HALO),
                             lambda n, t, co: (n, 0, 0, (t + 1) * (TT // HALO))),  # narrow halo
                pl.BlockSpec((TCO, K * C_in_p), lambda n, t, co: (co, 0)),
                pl.BlockSpec((TCO, 1), lambda n, t, co: (co, 0)),
            ],
            out_specs=pl.BlockSpec((1, TCO, TT), lambda n, t, co: (n, co, t)),
            scratch_shapes=[pltpu.VMEM((K * C_in_p, TT), compute_dtype)],
        ),
        compiler_params=pltpu.CompilerParams(
            dimension_semantics=("parallel", "parallel", "arbitrary"),
            vmem_limit_bytes=32 * 1024 * 1024,
        ),
        cost_estimate=pl.CostEstimate(
            flops=2 * N * C_out_p * L_out_p * K * C_in_p,
            transcendentals=0,
            bytes_accessed=int(bytes_accessed),
        ),
    )(x_s, x_s, w_mat, b_col)

    # Drop channel / length padding; NCL layout, dtype == x.dtype already.
    return out_p[:, :C_out, :L_out]


# --------------------------------- Main ------------------------------------ #
if __name__ == "__main__":
    def _reference(x, weight, bias, stride, dilation):
        # Same padding arithmetic; inputs rounded to bf16 (the kernel feeds
        # bf16 to the MXU with f32 accumulation), high-precision f32 conv.
        K = weight.shape[-1]
        L_in = x.shape[-1]
        eff_k = dilation * (K - 1) + 1
        L_out = math.ceil(L_in / stride)
        pad_needed = max((L_out - 1) * stride + eff_k - L_in, 0)
        pad_l = pad_needed // 2
        pad_r = pad_needed - pad_l
        x_r = x.astype(jnp.bfloat16).astype(jnp.float32)
        w_r = weight.astype(jnp.bfloat16).astype(jnp.float32)
        out = lax.conv_general_dilated(
            x_r, w_r, window_strides=(stride,), padding=[(pad_l, pad_r)],
            rhs_dilation=(dilation,), dimension_numbers=("NCH", "OIH", "NCH"),
            precision=lax.Precision.HIGHEST)
        return out + bias[None, :, None]

    def _run_case(N, C_in, C_out, K, stride, dilation, L):
        key = jax.random.PRNGKey(0)
        kx, kw, kb = jax.random.split(key, 3)
        x = jax.random.normal(kx, (N, C_in, L), dtype=jnp.float32)
        bound = 1.0 / math.sqrt(C_in * K)   # Conv1d default init range
        weight = jax.random.uniform(kw, (C_out, C_in, K), minval=-bound,
                                    maxval=bound, dtype=jnp.float32)
        bias = jax.random.uniform(kb, (C_out,), minval=-bound, maxval=bound,
                                  dtype=jnp.float32)

        out = jax.block_until_ready(
            same_pad_conv1d(x, weight, bias, stride=stride, dilation=dilation))

        L_out = math.ceil(L / stride)
        assert out.shape == (N, C_out, L_out), out.shape
        ref = _reference(x, weight, bias, stride, dilation)
        assert jnp.allclose(out, ref, atol=1e-3, rtol=1e-3), \
            f"mismatch vs reference (max abs err {jnp.max(jnp.abs(out - ref)):.3e})"

    # Primary small case (module example scale): strided conv.
    _run_case(N=2, C_in=4, C_out=8, K=5, stride=2, dilation=1, L=16)
    # stride==1 path (no polyphase relayout) with dilation.
    _run_case(N=2, C_in=4, C_out=8, K=3, stride=1, dilation=2, L=16)
    # Multi C_out-tile / multi time-tile path (exercises the cached unfold + halo).
    _run_case(N=1, C_in=3, C_out=160, K=7, stride=2, dilation=1, L=1500)

    print("KERNEL_OK")
</pallas_src>

<mosaic_0001>
module attributes {stable_mosaic.version = 11 : i64} {
  func.func @_conv_kernel(%arg0: i32, %arg1: i32, %arg2: i32, %arg3: memref<1x2x16x128xbf16, #tpu.memory_space<vmem>>, %arg4: memref<1x2x16x128xbf16, #tpu.memory_space<vmem>>, %arg5: memref<8x80xbf16, #tpu.memory_space<vmem>>, %arg6: memref<8x1xf32, #tpu.memory_space<vmem>>, %arg7: memref<1x8x128xf32, #tpu.memory_space<vmem>>, %arg8: memref<80x128xbf16, #tpu.memory_space<vmem>>) attributes {dimension_semantics = [#tpu.dimension_semantics<parallel>, #tpu.dimension_semantics<parallel>, #tpu.dimension_semantics<arbitrary>], iteration_bounds = array<i64: 2, 1, 1>, scalar_prefetch = 0 : i64, scratch_operands = 1 : i64, tpu.core_type = #tpu.core_type<tc>, window_params = [{transform_indices = @transform_0, window_bounds = array<i64: 1, 2, 16, 128>}, {transform_indices = @transform_1, window_bounds = array<i64: 1, 2, 16, 128>}, {transform_indices = @transform_2, window_bounds = array<i64: 8, 80>}, {transform_indices = @transform_3, window_bounds = array<i64: 8, 1>}, {transform_indices = @transform_4, window_bounds = array<i64: 1, 8, 128>}]} {
    %c0_i32 = arith.constant 0 : i32
    %0 = arith.cmpi eq, %arg2, %c0_i32 : i32
    %1 = arith.extui %0 : i1 to i32
    %c0_i32_0 = arith.constant 0 : i32
    %2 = arith.cmpi ne, %1, %c0_i32_0 : i32
    scf.if %2 {
      %c0_9 = arith.constant 0 : index
      %c0_10 = arith.constant 0 : index
      %c0_11 = arith.constant 0 : index
      %c0_12 = arith.constant 0 : index
      %12 = vector.load %arg3[%c0_9, %c0_10, %c0_11, %c0_12] : memref<1x2x16x128xbf16, #tpu.memory_space<vmem>>, vector<1x1x16x128xbf16>
      %13 = vector.shape_cast %12 : vector<1x1x16x128xbf16> to vector<16x128xbf16>
      %c0_13 = arith.constant 0 : index
      %c0_14 = arith.constant 0 : index
      %14 = vector.load %arg8[%c0_13, %c0_14] : memref<80x128xbf16, #tpu.memory_space<vmem>>, vector<16x128xbf16>
      tpu.vector_store %arg8[%c0_13, %c0_14], %13 {strides = array<i32>} : memref<80x128xbf16, #tpu.memory_space<vmem>>, vector<16x128xbf16>,
      %c0_15 = arith.constant 0 : index
      %c1 = arith.constant 1 : index
      %c0_16 = arith.constant 0 : index
      %c0_17 = arith.constant 0 : index
      %15 = vector.load %arg3[%c0_15, %c1, %c0_16, %c0_17] : memref<1x2x16x128xbf16, #tpu.memory_space<vmem>>, vector<1x1x16x128xbf16>
      %16 = vector.shape_cast %15 : vector<1x1x16x128xbf16> to vector<16x128xbf16>
      %c16 = arith.constant 16 : index
      %c0_18 = arith.constant 0 : index
      %17 = vector.load %arg8[%c16, %c0_18] : memref<80x128xbf16, #tpu.memory_space<vmem>>, vector<16x128xbf16>
      tpu.vector_store %arg8[%c16, %c0_18], %16 {strides = array<i32>} : memref<80x128xbf16, #tpu.memory_space<vmem>>, vector<16x128xbf16>,
      %c0_19 = arith.constant 0 : index
      %c0_20 = arith.constant 0 : index
      %c0_21 = arith.constant 0 : index
      %c1_22 = arith.constant 1 : index
      %18 = vector.load %arg3[%c0_19, %c0_20, %c0_21, %c1_22] : memref<1x2x16x128xbf16, #tpu.memory_space<vmem>>, vector<1x1x16x127xbf16>
      %19 = vector.shape_cast %18 : vector<1x1x16x127xbf16> to vector<16x127xbf16>
      %c32 = arith.constant 32 : index
      %c0_23 = arith.constant 0 : index
      %20 = vector.load %arg8[%c32, %c0_23] : memref<80x128xbf16, #tpu.memory_space<vmem>>, vector<16x127xbf16>
      tpu.vector_store %arg8[%c32, %c0_23], %19 {strides = array<i32>} : memref<80x128xbf16, #tpu.memory_space<vmem>>, vector<16x127xbf16>,
      %c0_24 = arith.constant 0 : index
      %c0_25 = arith.constant 0 : index
      %c0_26 = arith.constant 0 : index
      %c0_27 = arith.constant 0 : index
      %21 = vector.load %arg4[%c0_24, %c0_25, %c0_26, %c0_27] : memref<1x2x16x128xbf16, #tpu.memory_space<vmem>>, vector<1x1x16x1xbf16>
      %22 = vector.shape_cast %21 : vector<1x1x16x1xbf16> to vector<16x1xbf16>
      %c32_28 = arith.constant 32 : index
      %c127 = arith.constant 127 : index
      %23 = vector.load %arg8[%c32_28, %c127] : memref<80x128xbf16, #tpu.memory_space<vmem>>, vector<16x1xbf16>
      tpu.vector_store %arg8[%c32_28, %c127], %22 {strides = array<i32>} : memref<80x128xbf16, #tpu.memory_space<vmem>>, vector<16x1xbf16>,
      %c0_29 = arith.constant 0 : index
      %c1_30 = arith.constant 1 : index
      %c0_31 = arith.constant 0 : index
      %c1_32 = arith.constant 1 : index
      %24 = vector.load %arg3[%c0_29, %c1_30, %c0_31, %c1_32] : memref<1x2x16x128xbf16, #tpu.memory_space<vmem>>, vector<1x1x16x127xbf16>
      %25 = vector.shape_cast %24 : vector<1x1x16x127xbf16> to vector<16x127xbf16>
      %c48 = arith.constant 48 : index
      %c0_33 = arith.constant 0 : index
      %26 = vector.load %arg8[%c48, %c0_33] : memref<80x128xbf16, #tpu.memory_space<vmem>>, vector<16x127xbf16>
      tpu.vector_store %arg8[%c48, %c0_33], %25 {strides = array<i32>} : memref<80x128xbf16, #tpu.memory_space<vmem>>, vector<16x127xbf16>,
      %c0_34 = arith.constant 0 : index
      %c1_35 = arith.constant 1 : index
      %c0_36 = arith.constant 0 : index
      %c0_37 = arith.constant 0 : index
      %27 = vector.load %arg4[%c0_34, %c1_35, %c0_36, %c0_37] : memref<1x2x16x128xbf16, #tpu.memory_space<vmem>>, vector<1x1x16x1xbf16>
      %28 = vector.shape_cast %27 : vector<1x1x16x1xbf16> to vector<16x1xbf16>
      %c48_38 = arith.constant 48 : index
      %c127_39 = arith.constant 127 : index
      %29 = vector.load %arg8[%c48_38, %c127_39] : memref<80x128xbf16, #tpu.memory_space<vmem>>, vector<16x1xbf16>
      tpu.vector_store %arg8[%c48_38, %c127_39], %28 {strides = array<i32>} : memref<80x128xbf16, #tpu.memory_space<vmem>>, vector<16x1xbf16>,
      %c0_40 = arith.constant 0 : index
      %c0_41 = arith.constant 0 : index
      %c0_42 = arith.constant 0 : index
      %c2 = arith.constant 2 : index
      %30 = vector.load %arg3[%c0_40, %c0_41, %c0_42, %c2] : memref<1x2x16x128xbf16, #tpu.memory_space<vmem>>, vector<1x1x16x126xbf16>
      %31 = vector.shape_cast %30 : vector<1x1x16x126xbf16> to vector<16x126xbf16>
      %c64 = arith.constant 64 : index
      %c0_43 = arith.constant 0 : index
      %32 = vector.load %arg8[%c64, %c0_43] : memref<80x128xbf16, #tpu.memory_space<vmem>>, vector<16x126xbf16>
      tpu.vector_store %arg8[%c64, %c0_43], %31 {strides = array<i32>} : memref<80x128xbf16, #tpu.memory_space<vmem>>, vector<16x126xbf16>,
      %c0_44 = arith.constant 0 : index
      %c0_45 = arith.constant 0 : index
      %c0_46 = arith.constant 0 : index
      %c0_47 = arith.constant 0 : index
      %33 = vector.load %arg4[%c0_44, %c0_45, %c0_46, %c0_47] : memref<1x2x16x128xbf16, #tpu.memory_space<vmem>>, vector<1x1x16x2xbf16>
      %34 = vector.shape_cast %33 : vector<1x1x16x2xbf16> to vector<16x2xbf16>
      %c64_48 = arith.constant 64 : index
      %c126 = arith.constant 126 : index
      %35 = vector.load %arg8[%c64_48, %c126] : memref<80x128xbf16, #tpu.memory_space<vmem>>, vector<16x2xbf16>
      tpu.vector_store %arg8[%c64_48, %c126], %34 {strides = array<i32>} : memref<80x128xbf16, #tpu.memory_space<vmem>>, vector<16x2xbf16>,
    } else {
    }
    %c0 = arith.constant 0 : index
    %c0_1 = arith.constant 0 : index
    %3 = vector.load %arg5[%c0, %c0_1] : memref<8x80xbf16, #tpu.memory_space<vmem>>, vector<8x80xbf16>
    %c0_2 = arith.constant 0 : index
    %c0_3 = arith.constant 0 : index
    %4 = vector.load %arg8[%c0_2, %c0_3] : memref<80x128xbf16, #tpu.memory_space<vmem>>, vector<80x128xbf16>
    %cst = arith.constant dense<0.000000e+00> : vector<8x128xf32>
    %5 = tpu.matmul %3, %4, %cst {dimension_numbers = #tpu.dot_dimension_numbers<[1], [0], [0], [1], [0, 0, 1, 1], [], []>} : vector<8x80xbf16>, vector<80x128xbf16>, vector<8x128xf32> -> vector<8x128xf32>
    %c0_4 = arith.constant 0 : index
    %c0_5 = arith.constant 0 : index
    %6 = vector.load %arg6[%c0_4, %c0_5] : memref<8x1xf32, #tpu.memory_space<vmem>>, vector<8x1xf32>
    %7 = vector.broadcast %6 : vector<8x1xf32> to vector<8x128xf32>
    %8 = arith.addf %5, %7 : vector<8x128xf32>
    %c0_6 = arith.constant 0 : index
    %c0_7 = arith.constant 0 : index
    %c0_8 = arith.constant 0 : index
    %9 = vector.load %arg7[%c0_6, %c0_7, %c0_8] : memref<1x8x128xf32, #tpu.memory_space<vmem>>, vector<1x8x128xf32>
    %10 = vector.shape_cast %9 : vector<1x8x128xf32> to vector<8x128xf32>
    %11 = vector.shape_cast %8 : vector<8x128xf32> to vector<1x8x128xf32>
    tpu.vector_store %arg7[%c0_6, %c0_7, %c0_8], %11 {strides = array<i32>} : memref<1x8x128xf32, #tpu.memory_space<vmem>>, vector<1x8x128xf32>,
    return
  }
  func.func @transform_0(%arg0: i32, %arg1: i32, %arg2: i32) -> (i32, i32, i32, i32) {
    %c0_i32 = arith.constant 0 : i32
    %c0_i32_0 = arith.constant 0 : i32
    %c0_i32_1 = arith.constant 0 : i32
    return %arg0, %c0_i32, %c0_i32_0, %arg1 : i32, i32, i32, i32
  }
  func.func @transform_1(%arg0: i32, %arg1: i32, %arg2: i32) -> (i32, i32, i32, i32) {
    %c1_i32 = arith.constant 1 : i32
    %0 = arith.addi %arg1, %c1_i32 : i32
    %c1_i32_0 = arith.constant 1 : i32
    %1 = arith.muli %0, %c1_i32_0 : i32
    %c0_i32 = arith.constant 0 : i32
    %c0_i32_1 = arith.constant 0 : i32
    %c0_i32_2 = arith.constant 0 : i32
    return %arg0, %c0_i32, %c0_i32_1, %1 : i32, i32, i32, i32
  }
  func.func @transform_2(%arg0: i32, %arg1: i32, %arg2: i32) -> (i32, i32) {
    %c0_i32 = arith.constant 0 : i32
    %c0_i32_0 = arith.constant 0 : i32
    return %arg2, %c0_i32 : i32, i32
  }
  func.func @transform_3(%arg0: i32, %arg1: i32, %arg2: i32) -> (i32, i32) {
    %c0_i32 = arith.constant 0 : i32
    %c0_i32_0 = arith.constant 0 : i32
    return %arg2, %c0_i32 : i32, i32
  }
  func.func @transform_4(%arg0: i32, %arg1: i32, %arg2: i32) -> (i32, i32, i32) {
    %c0_i32 = arith.constant 0 : i32
    return %arg0, %arg2, %arg1 : i32, i32, i32
  }
}

</mosaic_0001>

<bundles_post_ra>
// kernel: tpu_custom_call.1
= control target key start
LH: loop header
LB: loop body
LE: loop exit
PB: predicated region body
PF: predicated region fallthrough
CT: control target
= control target key end

     0   :  { %s1196_s0 = inlined_call_operand.hbm [shape: bf16[2,2,16,256], index: 0, kind: input, shape index: {}]   ;;  %s1197_s1 = inlined_call_operand.hbm [shape: bf16[2,2,16,256], index: 1, kind: input, shape index: {}]   ;;  %s1198_s2 = inlined_call_operand.vmem [shape: bf16[8,80], index: 2, kind: input, shape index: {}]   ;;  %s1199_s3 = inlined_call_operand.vmem [shape: f32[8,1], index: 3, kind: input, shape index: {}]   ;;  %s1200_s4 = inlined_call_operand.hbm [shape: f32[2,8,128], index: 4, kind: output, shape index: {}]  }
   0x1   :  { %1205 = sst [smem:[#allocation13_spill]] %s1196_s0 }
   0x2   :  { %9 = vsyncpa [#allocation4], 0 }
   0x3   :  { %11 = vsyncpa [#allocation4 + $0x1], 0 }
   0x4   :  { %12 = vsyncpa [#allocation7], 0 }
   0x5   :  { %14 = vsyncpa [#allocation7 + $0x1], 0 }
   0x6   :  { %15 = vsyncpa [#allocation5], 0 }
   0x7   :  { %17 = vsyncpa [#allocation5 + $0x1], 0  ;;  %s958_s15 = smov 0   ;;  %s960_s16 = smov 0  }
   0x8   :  { %s962_s17 = smov 0   ;;  %s964_s18 = smov 0  }
   0x9   :  { %s966_s19 = smov 0   ;;  %s968_s20 = smov 0  }
   0xa LB: > { %s632_s21 = sadd.s32 4294967295, %s920_s20   ;;  %s633_s22 = sadd.s32 4294967294, %s920_s20   ;;  %s920_s20 = sphi %s968_s20, %s23_s20   ;;  %s916_s19 = sphi %s966_s19, %s1224_s19   ;;  %s912_s18 = sphi %s964_s18, %s1223_s18   ;;  %s908_s17 = sphi %s962_s17, %s1222_s17   ;;  %s904_s16 = sphi %s960_s16, %s1221_s16   ;;  %s900_s15 = sphi %s958_s15, %s1220_s15  }
   0xb   : > { %s42_s23 = sadd.s32 1, %s916_s19  ;;  %s51_s24 = sadd.s32 1, %s908_s17 }
   0xc   : > { %p44_p0 = scmp.ge.s32.totalorder %s42_s23, 2  ;;  %p58_p1 = scmp.ne.s32.totalorder %s908_s17, %s904_s16 }
   0xd   : > { %p59_p2 = scmp.eq.s32.totalorder %s920_s20, 0  ;;  %p64_p3 = scmp.ne.s32.totalorder %s904_s16, %s900_s15 }
   0xe   : > { %s1226_s23 = smov (%p44_p0, %s42_s23), 0  ;;  %p65_p5 = scmp.eq.s32.totalorder %s632_s21, 0 }
   0xf   : > { %1206 = sst [smem:[#allocation12_spill]] %s1226_s23  ;;  %p999_p4 = por %p59_p2, %p58_p1 }
  0x10   : > { %s46_s26 = ssub.s32 %s916_s19, %s1226_s23  ;;  %p174_p6 = scmp.eq.s32.totalorder %s632_s21, 1 }
  0x11   : > { %p49_p7 = scmp.eq.s32.totalorder %s46_s26, 0  ;;  %p1005_p8 = por %p65_p5, %p64_p3 }
  0x12   : > { %p1009_p9 = por %p174_p6, %p58_p1  ;;  %p180_p10 = scmp.eq.s32.totalorder %s633_s22, 1 }
  0x13   : > { %s1208_s27 = scalar_select %p1005_p8, 1, 0 }
  0x14   : > { %s1209_s28 = scalar_select %p1009_p9, 1, 0 }
  0x15   : > { %s1014_s29 = scalar_select %p49_p7, %s908_s17, %s51_s24  }
  0x16   : > { %p1016_p11 = por %p180_p10, %p64_p3  ;;  %p706_p13 = scmp.lt.s32.totalorder %s920_s20, 2 }
  0x17   : > { %s1023_s5 = sand.u32 1, %s908_s17   ;;  %s667_s7 = sshll.u32 %s916_s19, 9 }
  0x18   : > { %s1210_s30 = scalar_select %p1016_p11, 1, 0 }
  0x19   : > { %s638_s6 = sshll.u32 %s1023_s5, 4  ;;  %s1211_s0 = sld [smem:[#allocation13_spill]] }
  0x1a   : > { %s218_s11 = scalar_lea.vmem [#allocation3], %s638_s6  ;;  %p1040_p0 = pnand %p706_p13, %p999_p4 }
  0x1b   : > { %s226_s12 = sshll.u32 %s218_s11, 4  ;;  %s215_s14 = scalar_lea.sflag [#allocation4], %s1023_s5  ;;  %s1036_s12 = int_to_ptr.vmem [resolvable:$true] %s226_s12 }
  0x1c   : > { %p775_p2 = pneg %p1040_p0 }
  0x1f   : > { %s1032_s10 = scalar_lea.hbm %s1211_s0, %s667_s7  ;;  %s778_s26 = scalar_lea.hbm %s1211_s0, 1024 }
  0x20   : > { %s773_s21 = scalar_lea.hbm %s1032_s10, 256  ;;  %p779_p4 = scmp.lt.u32.totalorder %s1032_s10, %s1211_s0 }
  0x21   : > { %p774_p1 = scmp.ne.s32.totalorder %s1032_s10, %s773_s21  ;;  %p780_p6 = scmp.lt.u32.totalorder %s778_s26, %s773_s21 }
  0x22   : > { %p782_p10 = scmp.lt.u32.totalorder %s773_s21, %s1032_s10 }
  0x23   : > { %p776_p3 = pnand %p775_p2, %p774_p1  ;;  %p781_p7 = por %p780_p6, %p779_p4 }
  0x25   : > { %p777_p5 = pneg %p776_p3  ;;  %p783_p13 = por %p782_p10, %p781_p7 }
  0x27   : > { %p784_p12 = pnand %p783_p13, %p777_p5 }
  0x29   : > { %787 = shalt.err (!%p784_p12)
}
  0x2a   : > { %s788_s9 = scalar_lea.vmem %s1036_s12, 256  ;;  %s922_s11 = smov [#allocation3]  }
  0x2b   : > { %p789_p1 = scmp.ne.s32.totalorder %s1036_s12, %s788_s9  ;;  %s793_s22 = sshll.u32 %s922_s11, 4  ;;  %s794_s22 = int_to_ptr.vmem [resolvable:$false] %s793_s22 }
  0x2c   : > { %s795_s24 = scalar_lea.vmem %s794_s22, 512  ;;  %p796_p9 = scmp.lt.s32.totalorder %s1036_s12, %s794_s22 }
  0x2d   : > { %p791_p3 = pnand %p789_p1, %p775_p2  ;;  %p797_p4 = scmp.lt.s32.totalorder %s795_s24, %s788_s9 }
  0x2f   : > { %p792_p11 = pneg %p791_p3  ;;  %p798_p6 = por %p797_p4, %p796_p9 }
  0x31   : > { %p799_p7 = pnand %p798_p6, %p792_p11 }
  0x33   : > { %802 = shalt.err (!%p799_p7)
}
  0x34   : > { %s1203_s21 = smov 128   ;;  %s924_s26 = smov 64  }
  0x35   : > { %s925_s25 = smov 4   ;;  %p644_p9 = scmp.ge.s32.totalorder %s920_s20, 1 }
  0x36   : > { %698 = dma.hbm_to_vmem [thread:$0]  (!%p1040_p0), %s1032_s10, 256, %s1036_s12, %s215_s14, %s1203_s21, %s924_s26, %s925_s25  }
  0x37   : > { %p257_p11 = scmp.lt.s32.totalorder %s920_s20, 3  ;;  %s535_s22 = scalar_lea.hbm %s1197_s1, %s667_s7 }
  0x38   : > { %s1086_s24 = scalar_lea.hbm %s535_s22, 64  ;;  %s240_s0 = scalar_lea.vmem [#allocation6], %s638_s6 }
  0x39   : > { %p1077_p12 = pnand %p644_p9, %p257_p11  ;;  %s249_s23 = sshll.u32 %s240_s0, 4  ;;  %s1090_s23 = int_to_ptr.vmem [resolvable:$true] %s249_s23 }
  0x3a   : > { %s237_s10 = scalar_lea.sflag [#allocation7], %s1023_s5  ;;  %s833_s12 = scalar_lea.hbm %s535_s22, 320 }
  0x3b   : > { %p804_p5 = scmp.ne.s32.totalorder %s1086_s24, %s833_s12  ;;  %s808_s7 = scalar_lea.hbm %s1197_s1, 1024 }
  0x3c   : > { %p809_p1 = scmp.lt.u32.totalorder %s1086_s24, %s1197_s1  ;;  %p810_p3 = scmp.lt.u32.totalorder %s808_s7, %s833_s12 }
  0x3d   : > { %p806_p10 = pnand %p804_p5, %p775_p2  ;;  %p812_p6 = scmp.lt.u32.totalorder %s833_s12, %s1086_s24 }
  0x3e   : > { %p811_p4 = por %p810_p3, %p809_p1 }
  0x3f   : > { %p807_p13 = pneg %p806_p10 }
  0x40   : > { %p813_p7 = por %p812_p6, %p811_p4 }
  0x42   : > { %p814_p9 = pnand %p813_p7, %p807_p13 }
  0x44   : > { %817 = shalt.err (!%p814_p9)
}
  0x45   : > { %s818_s0 = scalar_lea.vmem %s1090_s23, 256  ;;  %s926_s6 = smov [#allocation6]  }
  0x46   : > { %p819_p11 = scmp.ne.s32.totalorder %s1090_s23, %s818_s0  ;;  %s823_s22 = sshll.u32 %s926_s6, 4  ;;  %s824_s22 = int_to_ptr.vmem [resolvable:$false] %s823_s22 }
  0x47   : > { %s825_s21 = scalar_lea.vmem %s824_s22, 512  ;;  %p826_p8 = scmp.lt.s32.totalorder %s1090_s23, %s824_s22 }
  0x48   : > { %p821_p5 = pnand %p819_p11, %p775_p2  ;;  %p827_p1 = scmp.lt.s32.totalorder %s825_s21, %s818_s0 }
  0x4a   : > { %p822_p10 = pneg %p821_p5  ;;  %p828_p3 = por %p827_p1, %p826_p8 }
  0x4c   : > { %p829_p4 = pnand %p828_p3, %p822_p10 }
  0x4e   : > { %832 = shalt.err (!%p829_p4)
}
  0x4f   : > { %s1214_s12 = smov 128   ;;  %261 = sbr.rel (%p1077_p12) target bundleno = 456 (0x1c8), region = 36 }
  0x50   : > { %701 = dma.hbm_to_vmem [thread:$0]  (!%p1040_p0), %s1086_s24, 256, %s1090_s23, %s237_s10, %s1214_s12, %s924_s26, %s925_s25  }
  0x51   : > { %s1123_s14 = sand.u32 (!%p1077_p12), 1, %s904_s16   ;;  %p1215_p8 = scmp.ne.s32.totalorder (!%p1077_p12), %s1208_s27, 0 }
  0x52   : > { %s645_s9 = sshll.u32 (!%p1077_p12), %s1123_s14, 4  ;;  %s264_s7 = scalar_lea.sflag (!%p1077_p12), [#allocation4], %s1123_s14 }
  0x53   : > { %s267_s13 = scalar_lea.vmem (!%p1077_p12), [#allocation3], %s645_s9 }
  0x56   : > { %887 = dma.done.wait (%p1215_p8), %s264_s7, 256  }
  0x57   : > { %889 = vsyncadd (%p1215_p8), %s264_s7, 4294967040  ;;  %s273_s23 = scalar_lea.sflag [#allocation7], %s1123_s14  ;;  %s276_s5 = scalar_lea.vmem [#allocation6], %s645_s9 }
  0x58   : > { %891 = dma.done.wait (%p1215_p8), %s273_s23, 256  }
  0x59   : > { %893 = vsyncadd (%p1215_p8), %s273_s23, 4294967040  ;;  %v927_v0 = vmov 0.0   ;;  %v765_v1 = vld [vmem:[%s267_s13] sm:$0xff]   ;;  %v766_v2 = vld [vmem:[%s267_s13 + $0x8] sm:$0xff]   ;;  %s928_s26 = smov 127   ;;  %s929_s25 = smov 126  }
  0x5a   : > { %675 = vmatprep.subr.bf16.mxu0 %v927_v0  ;;  %354 = vrot.lane.b32.xlu0 %v765_v1, %s928_s26  ;;  %v767_v3 = vld [vmem:[%s276_s5] sm:$0xff]   ;;  %v768_v4 = vld [vmem:[%s276_s5 + $0x8] sm:$0xff]   ;;  %vm930_vm0 = vmmov 0   ;;  %v931_v10 = vmov 0   ;;  %vm357_vm1 = vcmask 1039360   ;;  %vm369_vm2 = vcmask 1048568  }
  0x5b   : > { %378 = vrot.lane.b32.xlu1 %v766_v2, %s928_s26  ;;  %v769_v5 = vld [vmem:[%s267_s13] sm:$0xff]   ;;  %v772_v8 = vld [vmem:[%s267_s13 + $0x8] sm:$0xff]   ;;  %685 = vmatprep.mubr.msk.bf16.mxu0 %vm930_vm0, %v927_v0  ;;  %vm404_vm3 = vcmask 1031168   ;;  %vm416_vm4 = vcmask 1048560   ;;  %vm430_vm5 = vcmask 654336   ;;  %s647_s11 = sshll.u32 %s1123_s14, 3 }
  0x5c   : > { %v770_v6 = vld [vmem:[%s276_s5] sm:$0xff]   ;;  %v424_v9 = vld [vmem:[%s1199_s3] sm:$0xff]  ;;  %764 = vset.pattern.permute.xlu0 %v931_v10  ;;  %s664_s0 = sshll.u32 %s912_s18, 7  ;;  %s313_s6 = scalar_lea.vmem [#allocation8], %s647_s11 }
  0x5d   : > { %v771_v7 = vld [vmem:[%s267_s13] sm:$0xff]   ;;  %v418_v20 = vld [vmem:[%s1198_s2] sm:$0xf]  ;;  %s491_s22 = sshll.u32 %s313_s6, 4  ;;  %s1147_s9 = scalar_lea.hbm %s1200_s4, %s664_s0  ;;  %s1149_s22 = int_to_ptr.vmem [resolvable:$true] %s491_s22 }
  0x5e   : > { %366 = vrot.lane.b32.xlu0 %v767_v3, %s928_s26  ;;  %676 = vmatpush3.bf16.msra.mxu0 %v771_v7  ;;  %s476_s7 = scalar_lea.sflag [#allocation5], %s1123_s14  ;;  %s834_s18 = scalar_lea.vmem %s1149_s22, 128 }
  0x5f   : > { %390 = vrot.lane.b32.xlu1 %v768_v4, %s928_s26  ;;  %677 = vmatprep.subr.bf16.mxu0 %v927_v0  ;;  %p835_p0 = scmp.ne.s32.totalorder %s1149_s22, %s834_s18  ;;  %p1216_p2 = scmp.ne.s32.totalorder %s1209_s28, 0 }
  0x60   : > { %s932_s13 = smov [#allocation8]  }
  0x61   : > { %p836_p12 = pnand %p835_p0, %p1216_p2  ;;  %s838_s23 = sshll.u32 %s932_s13, 4  ;;  %s839_s23 = int_to_ptr.vmem [resolvable:$false] %s838_s23 }
  0x62   : > { %401 = vrot.lane.b32.xlu0 %v769_v5, %s929_s25  ;;  %678 = vmatpush3.bf16.msra.mxu0 %v772_v8  ;;  %s840_s5 = scalar_lea.vmem %s839_s23, 256  ;;  %p841_p6 = scmp.lt.s32.totalorder %s1149_s22, %s839_s23 }
  0x63   : > { %413 = vrot.lane.b32.xlu1 %v770_v6, %s929_s25  ;;  %679 = vmatprep.subr.bf16.mxu0 %v927_v0  ;;  %p837_p13 = pneg %p836_p12  ;;  %p842_p7 = scmp.lt.s32.totalorder %s840_s5, %s834_s18 }
  0x65   : > { %p843_p9 = por %p842_p7, %p841_p6 }
  0x66   : > { %427 = vperm.xlu0 %764, %v424_v9  }
  0x67   : > { %p844_p11 = pnand %p843_p9, %p837_p13 }
  0xcc   : > { %v355_v11 = vpop.permute.xlu0 %354 }
  0xcd   : > { %358 = vst.msk [vmem:[#allocation2 + $0x10] sm:$0xff] %vm357_vm1, %v355_v11  ;;  %v379_v12 = vpop.permute.xlu1 %378 }
  0xce   : > { %381 = vst.msk [vmem:[#allocation2 + $0x18] sm:$0xff] %vm357_vm1, %v379_v12 }
  0xd0   : > { %v367_v13 = vpop.permute.xlu0 %366 }
  0xd1   : > { %370 = vst.msk [vmem:[#allocation2 + $0x10] sm:$0xff] %vm369_vm2, %v367_v13  ;;  %v391_v14 = vpop.permute.xlu1 %390 }
  0xd2   : > { %393 = vst.msk [vmem:[#allocation2 + $0x18] sm:$0xff] %vm369_vm2, %v391_v14 }
  0xd4   : > { %v402_v15 = vpop.permute.xlu0 %401 }
  0xd5   : > { %405 = vst.msk [vmem:[#allocation2 + $0x20] sm:$0xff] %vm404_vm3, %v402_v15  ;;  %v414_v16 = vpop.permute.xlu1 %413 }
  0xd6   : > { %417 = vst.msk [vmem:[#allocation2 + $0x20] sm:$0xff] %vm416_vm4, %v414_v16 }
  0xd8   : > { %v421_v17 = vld [vmem:[#allocation2 + $0x10] sm:$0xff] }
  0xd9   : > { %680 = vmatpush3.bf16.msra.mxu0 %v421_v17  ;;  %v422_v18 = vld [vmem:[#allocation2 + $0x18] sm:$0xff] }
  0xda   : > { %681 = vmatprep.subr.bf16.mxu0 %v927_v0 }
  0xdd   : > { %682 = vmatpush3.bf16.msra.mxu0 %v422_v18  ;;  %v423_v19 = vld [vmem:[#allocation2 + $0x20] sm:$0xff] }
  0xde   : > { %683 = vmatprep.subr.bf16.mxu0 %v927_v0 }
  0xe1   : > { %684 = vmatpush3.bf16.msra.mxu0 %v423_v19 }
  0xe4   : > { %686 = vmatmul.mubr.msk.bf16.vlgmr.msra.gmra.mrb[0].mxu0 %vm430_vm5, %v418_v20 }
  0xe5   : > { %v428_v21 = vpop.permute.xlu0 %427 }
 0x1b7   : > { %v468_v22 = vpop.f32.mrb[0].mxu0 }
 0x1b8   : > { %v469_v23 = vadd.f32 %v468_v22, %v428_v21  ;;  %v687_v24 = vpop.f32.mrb[1].mxu0 }
 0x1b9   : > { %v471_v25 = vpop.f32.mrb[2].mxu0 }
 0x1ba   : > { %474 = vst [vmem:[%s313_s6] sm:$0xff] %v469_v23  ;;  %v688_v26 = vpop.f32.mrb[3].mxu0 }
 0x1bb   : > { %847 = shalt.err (!%p844_p11)
}
 0x1bc   : > { %s848_s14 = scalar_lea.hbm %s1147_s9, 128  ;;  %s852_s27 = scalar_lea.hbm %s1200_s4, 256 }
 0x1bd   : > { %p849_p5 = scmp.ne.s32.totalorder %s1147_s9, %s848_s14  ;;  %p853_p3 = scmp.lt.u32.totalorder %s1147_s9, %s1200_s4 }
 0x1be   : > { %p854_p4 = scmp.lt.u32.totalorder %s852_s27, %s848_s14  ;;  %p856_p0 = scmp.lt.u32.totalorder %s848_s14, %s1147_s9 }
 0x1bf   : > { %p850_p10 = pnand %p849_p5, %p1216_p2 }
 0x1c0   : > { %p855_p8 = por %p854_p4, %p853_p3 }
 0x1c1   : > { %p851_p1 = pneg %p850_p10 }
 0x1c2   : > { %p857_p12 = por %p856_p0, %p855_p8 }
 0x1c4   : > { %p858_p13 = pnand %p857_p12, %p851_p1 }
 0x1c6   : > { %861 = shalt.err (!%p858_p13)
}
 0x1c7   : > { %693 = dma.vmem_to_hbm [thread:$0]  (%p1216_p2), %s1149_s22, 128, %s1147_s9, %s476_s7  }
 0x1c8 PF: > { %s503_s10 = sand.u32 1, %s900_s15   ;;  %p1217_p6 = scmp.ne.s32.totalorder %s1210_s30, 0 }
 0x1c9   : > { %p1218_p7 = scmp.ge.s32.totalorder %s920_s20, 2  ;;  %s504_s11 = scalar_lea.sflag [#allocation5], %s503_s10 }
 0x1cb   : > { %p703_p9 = pnand %p1218_p7, %p1217_p6 }
 0x1cd   : > { %895 = dma.done.wait (!%p703_p9), %s504_s11, 128  }
 0x1ce   : > { %897 = vsyncadd (!%p703_p9), %s504_s11, 4294967168  ;;  %s23_s20 = sadd.s32 1, %s920_s20   ;;  %s1219_s28 = sld [smem:[#allocation12_spill]] }
 0x1cf   : > { %p20_p11 = scmp.ge.s32.totalorder %s23_s20, 4   ;;  %s1220_s15 = smov %s904_s16 }
 0x1d0   : > { %s1221_s16 = smov %s908_s17  ;;  %s1222_s17 = smov %s1014_s29 }
 0x1d1   : > { %s1223_s18 = smov %s916_s19  ;;  %22 = sbr.rel (!%p20_p11) target bundleno = 10 (0xa), region = 106 }
 0x1d4   : > { %s1224_s19 = smov %s1219_s28 }
 0x1d8   :  { %509 = vsyncpa [#allocation4], 1 }
 0x1d9   :  { %511 = vsyncpa [#allocation4 + $0x1], 1 }
 0x1da   :  { %512 = vsyncpa [#allocation7], 1 }
 0x1db   :  { %514 = vsyncpa [#allocation7 + $0x1], 1 }
 0x1dc   :  { %515 = vsyncpa [#allocation5], 1 }
 0x1dd   :  { %517 = vsyncpa [#allocation5 + $0x1], 1 }

</bundles_post_ra>
